<compile_context>
chip_gen: v7x
topology: tpu7x:2x2x1
jax: 0.10.0
libtpu: 0.0.40
codegen_flags: <defaults>
</compile_context>

<pallas_src>
import jax
import jax.numpy as jnp
from jax.experimental import pallas as pl
from jax.experimental.pallas import tpu as pltpu

_LANE = 512    # lane-dense last dim (multiple of 128 -> full unmasked vst)
_TM = 2048     # row tile (multiple of 8); 2048 x 512 f32 = 4 MiB per block


def _copy_kernel(x_ref, o_ref):
    # Pure pass-through of the current VMEM tile.
    o_ref[...] = x_ref[...]


def _dma_copy_kernel(x_hbm_ref, o_hbm_ref, sem):
    # Single whole-array HBM->HBM DMA: no VMEM round trip, no TensorCore loop.
    cp = pltpu.make_async_copy(x_hbm_ref, o_hbm_ref, sem)
    cp.start()
    cp.wait()


def identity_copy_dma(x):
    """Identity copy via a direct HBM->HBM async DMA (no VMEM staging)."""
    bytes_accessed = 2 * x.size * jnp.dtype(x.dtype).itemsize
    return pl.pallas_call(
        _dma_copy_kernel,
        out_shape=jax.ShapeDtypeStruct(x.shape, x.dtype),
        in_specs=[pl.BlockSpec(memory_space=pl.ANY)],
        out_specs=pl.BlockSpec(memory_space=pl.ANY),
        scratch_shapes=[pltpu.SemaphoreType.DMA],
        cost_estimate=pl.CostEstimate(
            flops=0, transcendentals=0, bytes_accessed=bytes_accessed),
    )(x)


def identity_copy_tiled(x):
    """Lane-dense, tiled Pallas identity copy (BlockSpec pipelined path).

    No jnp.pad / slice wrapper ops: the last (ragged) row block is masked by
    Pallas; sizes that are not a multiple of _LANE use a single full-extent
    block instead of padding.
    """
    orig_shape = x.shape
    n = x.size
    flat = x.reshape(-1)
    bytes_accessed = 2 * n * jnp.dtype(x.dtype).itemsize

    if n >= _LANE and n % _LANE == 0:
        rows = n // _LANE
        x2d = flat.reshape(rows, _LANE)
        # Full-extent block when small (legal even if rows % 8 != 0);
        # otherwise a (2048, 512) tile with a ragged (masked) last block.
        tm = _TM if rows >= _TM else rows
        grid_rows = pl.cdiv(rows, tm)

        out2d = pl.pallas_call(
            _copy_kernel,
            out_shape=jax.ShapeDtypeStruct((rows, _LANE), x2d.dtype),
            grid=(grid_rows,),
            in_specs=[pl.BlockSpec((tm, _LANE), lambda i: (i, 0))],
            out_specs=pl.BlockSpec((tm, _LANE), lambda i: (i, 0)),
            compiler_params=pltpu.CompilerParams(
                # ~16 MiB double-buffered in+out at 4 MiB/block -- explicit
                # limit keeps the same kernel portable to v7x (64 MiB VMEM).
                vmem_limit_bytes=32 * 1024 * 1024,
                dimension_semantics=("parallel",),
            ),
            cost_estimate=pl.CostEstimate(
                flops=0, transcendentals=0, bytes_accessed=bytes_accessed),
        )(x2d)
        return out2d.reshape(orig_shape)

    # Small / non-lane-multiple fallback: single full-extent block, no padding.
    out = pl.pallas_call(
        _copy_kernel,
        out_shape=jax.ShapeDtypeStruct(flat.shape, flat.dtype),
        cost_estimate=pl.CostEstimate(
            flops=0, transcendentals=0, bytes_accessed=bytes_accessed),
    )(flat)
    return out.reshape(orig_shape)


def model_forward(x):
    """Pallas equivalent of Model.forward.

    The PyTorch forward is a no-op (`pass` -> returns None), so there is no
    computation to run.  The optimal implementation on every TPU generation
    is to skip any kernel and return the input directly: no HBM reads/writes,
    no launch overhead.
    """
    return x


if __name__ == "__main__":
    key = jax.random.PRNGKey(0)
    # Small NCHW input consistent with a generic image-like module.
    x = jax.random.normal(key, (2, 4, 16, 16), dtype=jnp.float32)

    # Faithful forward: no-op passthrough (reference returns None).
    out = model_forward(x)
    jax.block_until_ready(out)
    assert out.shape == x.shape

    # Exercise the HBM->HBM DMA identity path.
    dma_out = identity_copy_dma(x)
    jax.block_until_ready(dma_out)
    assert dma_out.shape == x.shape
    assert bool(jnp.all(dma_out == x))

    # Exercise the tiled, lane-dense BlockSpec identity path.
    tiled_out = identity_copy_tiled(x)
    jax.block_until_ready(tiled_out)
    assert tiled_out.shape == x.shape
    assert bool(jnp.all(tiled_out == x))

    print("KERNEL_OK")
</pallas_src>

<mosaic_0001>
module attributes {stable_mosaic.version = 11 : i64} {
  func.func @_dma_copy_kernel(%arg0: memref<2x4x16x16xf32, #tpu.memory_space<any>>, %arg1: memref<2x4x16x16xf32, #tpu.memory_space<any>>, %arg2: memref<!tpu.dma_semaphore, #tpu.memory_space<semaphore_mem>>) attributes {dimension_semantics = [], scalar_prefetch = 0 : i64, scratch_operands = 1 : i64, tpu.core_type = #tpu.core_type<tc>} {
    tpu.enqueue_dma source(%arg0 : memref<2x4x16x16xf32, #tpu.memory_space<any>>) target(%arg1 : memref<2x4x16x16xf32, #tpu.memory_space<any>>) target_semaphore(%arg2 : memref<!tpu.dma_semaphore, #tpu.memory_space<semaphore_mem>>)
    tpu.wait_dma2 semaphore(%arg2 : memref<!tpu.dma_semaphore, #tpu.memory_space<semaphore_mem>>) src(%arg0 : memref<2x4x16x16xf32, #tpu.memory_space<any>>) dst(%arg1 : memref<2x4x16x16xf32, #tpu.memory_space<any>>)
    return
  }
}

</mosaic_0001>

<bundles_post_ra>
// kernel: tpu_custom_call.1
= control target key start
LH: loop header
LB: loop body
LE: loop exit
PB: predicated region body
PF: predicated region fallthrough
CT: control target
= control target key end

     0   :  { %s36_s6 = smov [#allocation2]   ;;  %s37_s7 = smov [#allocation3]   ;;  %s55_s0 = inlined_call_operand.hbm [shape: f32[2,4,16,16], index: 0, kind: input, shape index: {}]   ;;  %s56_s1 = inlined_call_operand.hbm [shape: f32[2,4,16,16], index: 1, kind: output, shape index: {}]  }
   0x1   :  { %s38_s8 = smov 0  }
   0x2   :  { %18 = dma.general %s55_s0, 2048, %s56_s1, %s36_s6, %s37_s7, [#allocation4], %s38_s8, 0  }
   0x3   :  { %34 = dma.done.wait [#allocation2], 2048 }
   0x4   :  { %35 = vsyncadd [#allocation2], 4294965248 }
   0x5   :  { %24 = vsyncmov [#allocation2] }
   0x8   :  { %s25_s13 = vpop.sfrf %24 }
   0x9   :  { %p30_p0 = scmp.ne.s32.totalorder %s25_s13, 0 }
   0xb   :  { %29 = shalt.err (%p30_p0)  }

</bundles_post_ra>
